<compile_context>
chip_gen: v7x
topology: tpu7x:2x2x1
jax: 0.10.0
libtpu: 0.0.40
codegen_flags: <defaults>
</compile_context>

<pallas_src>
import jax
import jax.numpy as jnp
from jax.experimental import pallas as pl
from jax.experimental.pallas import tpu as pltpu

IN_F = 7       # view(-1, 7) input features
HID_F = 14     # fc1 / t1 width
OUT_F = 10     # t2 output width

LANE = 128           # lane tile (batch sits on lanes)
MAX_TILE_N = 32768   # lanes (batch rows) per grid step; sweepable 16K-64K


def _round_up(n, m):
    return ((n + m - 1) // m) * m


def generator_kernel(x_ref, w12_ref, b12_ref, w3_ref, b3_ref, out_ref):
    """Fused 2-layer MLP in (features, batch) layout.

    x_ref:   (7,  TILE_N)   input tile, batch on lanes
    w12_ref: (14, 7)        folded fc1->t1 weight (out, in)
    b12_ref: (14, 1)        folded bias (broadcast along lanes)
    w3_ref:  (10, 14)       t2 weight (out, in)
    b3_ref:  (10, 1)        t2 bias
    out_ref: (10, TILE_N)   output tile, batch on lanes
    """
    x = x_ref[...]
    h = jnp.tanh(
        jnp.dot(w12_ref[...], x, preferred_element_type=jnp.float32) + b12_ref[...]
    )
    y = jnp.tanh(
        jnp.dot(w3_ref[...], h, preferred_element_type=jnp.float32) + b3_ref[...]
    )
    out_ref[...] = y.astype(out_ref.dtype)


def prepare_params(params):
    """Fold fc1 into t1 once (call at init time, not per forward).

    params: PyTorch-convention (out_features, in_features) weights
            (w1, b1, w2, b2, w3, b3)
    returns kernel-ready (w12, b12, w3, b3) with biases as (F, 1) columns.
    """
    w1, b1, w2, b2, w3, b3 = [jnp.asarray(p, jnp.float32) for p in params]
    w12 = w2 @ w1                      # (14, 7)
    b12 = w2 @ b1 + b2                 # (14,)
    return (w12, b12.reshape(HID_F, 1), w3, b3.reshape(OUT_F, 1))


def _pick_tiling(n_pad):
    """Tile size (multiple of LANE) and grid size.

    Ensures >= 2 grid steps when the padded batch allows it (v7x megacore
    sharding of the "parallel" axis) and caps the tile at MAX_TILE_N.
    """
    if n_pad >= 2 * LANE:
        half = _round_up(pl.cdiv(n_pad, 2), LANE)
        tile_n = min(MAX_TILE_N, half)
    else:
        tile_n = n_pad
    num_tiles = pl.cdiv(n_pad, tile_n)
    return tile_n, num_tiles


def _call_kernel(xt, prepped, tile_n, num_tiles):
    """xt: (7, n_pad) f32 with n_pad a multiple of LANE. Returns (10, n_pad)."""
    w12, b12, w3, b3 = prepped
    n_pad = xt.shape[1]

    # VMEM budget: double-buffered in (7->8 sublanes) + out (10->16 sublanes)
    # f32 tiles, plus a few (16, tile_n) f32 temporaries, plus slack.
    # Floor 32 MiB (safe default everywhere), cap 64 MiB (v7x physical VMEM).
    vmem_est = 4 * tile_n * (2 * (8 + 16) + 4 * 16) + (2 << 20)
    vmem_limit = int(min(64 << 20, max(32 << 20, vmem_est)))

    return pl.pallas_call(
        generator_kernel,
        out_shape=jax.ShapeDtypeStruct((OUT_F, n_pad), jnp.float32),
        grid=(num_tiles,),
        in_specs=[
            pl.BlockSpec((IN_F, tile_n), lambda i: (0, i)),      # x tile
            pl.BlockSpec((HID_F, IN_F), lambda i: (0, 0)),       # w12 (resident)
            pl.BlockSpec((HID_F, 1), lambda i: (0, 0)),          # b12 (resident)
            pl.BlockSpec((OUT_F, HID_F), lambda i: (0, 0)),      # w3  (resident)
            pl.BlockSpec((OUT_F, 1), lambda i: (0, 0)),          # b3  (resident)
        ],
        out_specs=pl.BlockSpec((OUT_F, tile_n), lambda i: (0, i)),
        compiler_params=pltpu.CompilerParams(
            dimension_semantics=("parallel",),
            vmem_limit_bytes=vmem_limit,
        ),
    )(xt, w12, b12, w3, b3)


@jax.jit
def generator_forward(x, prepped):
    """Module-semantics path: any x with numel % 7 == 0 -> (N, 10) f32.

    The transpose/pad/slice live inside the same jit as the kernel so XLA can
    fuse them; for zero wrapper traffic use generator_forward_batch_on_lanes.
    """
    x2 = jnp.reshape(x, (-1, IN_F)).astype(jnp.float32)      # (N, 7)
    n = x2.shape[0]
    n_pad = _round_up(n, LANE)                                # pad to 128 only
    tile_n, num_tiles = _pick_tiling(n_pad)
    xt = jnp.pad(x2.T, ((0, 0), (0, n_pad - n)))              # (7, n_pad)
    out_t = _call_kernel(xt, prepped, tile_n, num_tiles)      # (10, n_pad)
    return out_t[:, :n].T                                     # (N, 10)


@jax.jit
def generator_forward_batch_on_lanes(xt, prepped):
    """Fast path: input (7, N), output (10, N). No wrapper transposes."""
    n = xt.shape[1]
    n_pad = _round_up(n, LANE)
    tile_n, num_tiles = _pick_tiling(n_pad)
    xt = jnp.pad(xt.astype(jnp.float32), ((0, 0), (0, n_pad - n)))
    out_t = _call_kernel(xt, prepped, tile_n, num_tiles)
    return out_t[:, :n]


def init_params(key):
    """Deterministic init matching PyTorch Linear shapes: W is (out, in)."""
    ks = jax.random.split(key, 6)

    def linear(kw, kb, fan_in, fan_out):
        bound = 1.0 / jnp.sqrt(fan_in)
        w = jax.random.uniform(kw, (fan_out, fan_in), jnp.float32, -bound, bound)
        b = jax.random.uniform(kb, (fan_out,), jnp.float32, -bound, bound)
        return w, b

    w1, b1 = linear(ks[0], ks[1], IN_F, HID_F)
    w2, b2 = linear(ks[2], ks[3], HID_F, HID_F)
    w3, b3 = linear(ks[4], ks[5], HID_F, OUT_F)
    return (w1, b1, w2, b2, w3, b3)


def reference_forward(x, params):
    """Unfused 3-layer reference (mirrors the PyTorch module exactly)."""
    w1, b1, w2, b2, w3, b3 = params
    x2 = jnp.reshape(x, (-1, IN_F)).astype(jnp.float32)
    h1 = x2 @ w1.T + b1
    h2 = jnp.tanh(h1 @ w2.T + b2)
    return jnp.tanh(h2 @ w3.T + b3)


if __name__ == "__main__":
    key = jax.random.PRNGKey(0)
    kx1, kx2, kx3, kp = jax.random.split(key, 4)

    params = init_params(kp)
    prepped = prepare_params(params)   # fold fc1 into t1 once, at init

    # 1) Small module-shaped input; forward views it to (-1, 7) -> batch of 8.
    x_small = jax.random.normal(kx1, (2, 4, IN_F), dtype=jnp.float32)
    out_small = jax.block_until_ready(generator_forward(x_small, prepped))
    ref_small = reference_forward(x_small, params)
    assert out_small.shape == (8, OUT_F), out_small.shape
    assert jnp.allclose(out_small, ref_small, atol=1e-5, rtol=1e-5), "small mismatch"

    # 2) Medium batch exercising >1 grid step and a ragged last block
    #    (N=300 -> n_pad=384, tile_n=256, grid=2).
    x_med = jax.random.normal(kx2, (300, IN_F), dtype=jnp.float32)
    out_med = jax.block_until_ready(generator_forward(x_med, prepped))
    ref_med = reference_forward(x_med, params)
    assert out_med.shape == (300, OUT_F), out_med.shape
    assert jnp.allclose(out_med, ref_med, atol=1e-5, rtol=1e-5), "medium mismatch"

    # 3) Transpose-free fast path: latent produced directly in (7, N) layout.
    xt = jax.random.normal(kx3, (IN_F, 1000), dtype=jnp.float32)
    out_fast = jax.block_until_ready(generator_forward_batch_on_lanes(xt, prepped))
    ref_fast = reference_forward(xt.T, params)
    assert out_fast.shape == (OUT_F, 1000), out_fast.shape
    assert jnp.allclose(out_fast.T, ref_fast, atol=1e-5, rtol=1e-5), "fast-path mismatch"

    print("KERNEL_OK")
</pallas_src>

<mosaic_0001>
module attributes {stable_mosaic.version = 11 : i64} {
  func.func @generator_kernel(%arg0: i32, %arg1: memref<7x128xf32, #tpu.memory_space<vmem>>, %arg2: memref<14x7xf32, #tpu.memory_space<vmem>>, %arg3: memref<14x1xf32, #tpu.memory_space<vmem>>, %arg4: memref<10x14xf32, #tpu.memory_space<vmem>>, %arg5: memref<10x1xf32, #tpu.memory_space<vmem>>, %arg6: memref<10x128xf32, #tpu.memory_space<vmem>>) attributes {dimension_semantics = [#tpu.dimension_semantics<parallel>], iteration_bounds = array<i64: 1>, scalar_prefetch = 0 : i64, scratch_operands = 0 : i64, tpu.core_type = #tpu.core_type<tc>, window_params = [{transform_indices = @transform_0, window_bounds = array<i64: 7, 128>}, {pipeline_mode = #tpu.pipeline_mode<synchronous>, transform_indices = @transform_1, window_bounds = array<i64: 14, 7>}, {pipeline_mode = #tpu.pipeline_mode<synchronous>, transform_indices = @transform_2, window_bounds = array<i64: 14, 1>}, {pipeline_mode = #tpu.pipeline_mode<synchronous>, transform_indices = @transform_3, window_bounds = array<i64: 10, 14>}, {pipeline_mode = #tpu.pipeline_mode<synchronous>, transform_indices = @transform_4, window_bounds = array<i64: 10, 1>}, {transform_indices = @transform_5, window_bounds = array<i64: 10, 128>}]} {
    %c0 = arith.constant 0 : index
    %c0_0 = arith.constant 0 : index
    %0 = vector.load %arg1[%c0, %c0_0] : memref<7x128xf32, #tpu.memory_space<vmem>>, vector<7x128xf32>
    %c0_1 = arith.constant 0 : index
    %c0_2 = arith.constant 0 : index
    %1 = vector.load %arg2[%c0_1, %c0_2] : memref<14x7xf32, #tpu.memory_space<vmem>>, vector<14x7xf32>
    %cst = arith.constant dense<0.000000e+00> : vector<14x128xf32>
    %2 = tpu.matmul %1, %0, %cst {dimension_numbers = #tpu.dot_dimension_numbers<[1], [0], [0], [1], [0, 0, 1, 1], [], []>} : vector<14x7xf32>, vector<7x128xf32>, vector<14x128xf32> -> vector<14x128xf32>
    %c0_3 = arith.constant 0 : index
    %c0_4 = arith.constant 0 : index
    %3 = vector.load %arg3[%c0_3, %c0_4] : memref<14x1xf32, #tpu.memory_space<vmem>>, vector<14x1xf32>
    %4 = vector.broadcast %3 : vector<14x1xf32> to vector<14x128xf32>
    %5 = arith.addf %2, %4 : vector<14x128xf32>
    %6 = math.tanh %5 : vector<14x128xf32>
    %c0_5 = arith.constant 0 : index
    %c0_6 = arith.constant 0 : index
    %7 = vector.load %arg4[%c0_5, %c0_6] : memref<10x14xf32, #tpu.memory_space<vmem>>, vector<10x14xf32>
    %cst_7 = arith.constant dense<0.000000e+00> : vector<10x128xf32>
    %8 = tpu.matmul %7, %6, %cst_7 {dimension_numbers = #tpu.dot_dimension_numbers<[1], [0], [0], [1], [0, 0, 1, 1], [], []>} : vector<10x14xf32>, vector<14x128xf32>, vector<10x128xf32> -> vector<10x128xf32>
    %c0_8 = arith.constant 0 : index
    %c0_9 = arith.constant 0 : index
    %9 = vector.load %arg5[%c0_8, %c0_9] : memref<10x1xf32, #tpu.memory_space<vmem>>, vector<10x1xf32>
    %10 = vector.broadcast %9 : vector<10x1xf32> to vector<10x128xf32>
    %11 = arith.addf %8, %10 : vector<10x128xf32>
    %12 = math.tanh %11 : vector<10x128xf32>
    %c0_10 = arith.constant 0 : index
    %c0_11 = arith.constant 0 : index
    %13 = vector.load %arg6[%c0_10, %c0_11] : memref<10x128xf32, #tpu.memory_space<vmem>>, vector<10x128xf32>
    tpu.vector_store %arg6[%c0_10, %c0_11], %12 {strides = array<i32>} : memref<10x128xf32, #tpu.memory_space<vmem>>, vector<10x128xf32>,
    return
  }
  func.func @transform_0(%arg0: i32) -> (i32, i32) {
    %c0_i32 = arith.constant 0 : i32
    %c0_i32_0 = arith.constant 0 : i32
    return %c0_i32, %arg0 : i32, i32
  }
  func.func @transform_1(%arg0: i32) -> (i32, i32) {
    %c0_i32 = arith.constant 0 : i32
    %c0_i32_0 = arith.constant 0 : i32
    %c0_i32_1 = arith.constant 0 : i32
    return %c0_i32, %c0_i32_0 : i32, i32
  }
  func.func @transform_2(%arg0: i32) -> (i32, i32) {
    %c0_i32 = arith.constant 0 : i32
    %c0_i32_0 = arith.constant 0 : i32
    %c0_i32_1 = arith.constant 0 : i32
    return %c0_i32, %c0_i32_0 : i32, i32
  }
  func.func @transform_3(%arg0: i32) -> (i32, i32) {
    %c0_i32 = arith.constant 0 : i32
    %c0_i32_0 = arith.constant 0 : i32
    %c0_i32_1 = arith.constant 0 : i32
    return %c0_i32, %c0_i32_0 : i32, i32
  }
  func.func @transform_4(%arg0: i32) -> (i32, i32) {
    %c0_i32 = arith.constant 0 : i32
    %c0_i32_0 = arith.constant 0 : i32
    %c0_i32_1 = arith.constant 0 : i32
    return %c0_i32, %c0_i32_0 : i32, i32
  }
  func.func @transform_5(%arg0: i32) -> (i32, i32) {
    %c0_i32 = arith.constant 0 : i32
    %c0_i32_0 = arith.constant 0 : i32
    return %c0_i32, %arg0 : i32, i32
  }
}

</mosaic_0001>

<bundles_post_ra>
// kernel: generator_forward.1
= control target key start
LH: loop header
LB: loop body
LE: loop exit
PB: predicated region body
PF: predicated region fallthrough
CT: control target
= control target key end

     0   :  { %vm42_vm0 = vcmask 1046528   ;;  %vm35_vm1 = vcmask 56320   ;;  %v274_v3 = vmov 0   ;;  %vm137_vm2 = vcmask 113664   ;;  %s341_s0 = inlined_call_operand.vmem [shape: f32[7,128], index: 0, kind: input, shape index: {}]   ;;  %s342_s1 = inlined_call_operand.vmem [shape: f32[14,7], index: 1, kind: input, shape index: {}]   ;;  %s343_s2 = inlined_call_operand.vmem [shape: f32[14,1], index: 2, kind: input, shape index: {}]   ;;  %s344_s3 = inlined_call_operand.vmem [shape: f32[10,14], index: 3, kind: input, shape index: {}]   ;;  %s345_s4 = inlined_call_operand.vmem [shape: f32[10,1], index: 4, kind: input, shape index: {}]   ;;  %s346_s5 = inlined_call_operand.vmem [shape: f32[10,128], index: 5, kind: output, shape index: {}]  }
   0x1   :  { %v20_v0 = vld [vmem:[%s341_s0] sm:$0x7f]  ;;  %v22_v2 = vld [vmem:[%s342_s1 + $0x8] sm:$0x3f]  ;;  %264 = vset.pattern.permute.xlu0 %v274_v3  ;;  %265 = vset.pattern.permute.xlu1 %v274_v3  ;;  %vm144_vm3 = vcmask 1045504   ;;  %vm275_vm4 = vmmov 1  }
   0x2   :  { %v21_v1 = vld [vmem:[%s342_s1] sm:$0xff]  ;;  %244 = vmatprep.subr.msk.mxu0 %vm42_vm0, %v20_v0  ;;  %v24_v5 = vld [vmem:[%s343_s2 + $0x8] sm:$0x3f]  ;;  %vm257_vm5 = vmpackc.low %vm144_vm3, %vm275_vm4 }
   0x3   :  { %246 = vmatprep.mubr.msk.f32.mxu0 %vm35_vm1, %v21_v1  ;;  %v23_v4 = vld [vmem:[%s343_s2] sm:$0xff]  ;;  %245 = vmatpush3.msk.msra.mxu0 %vm42_vm0, %v20_v0  ;;  %v126_v8 = vld [vmem:[%s345_s4 + $0x8] sm:$0x3] }
   0x4   :  { %27 = vperm.xlu0 %264, %v23_v4   ;;  %247 = vmatmul.mubr.msk.f32.vlgmr.msra.gmra.mrb[0].mxu0 %vm35_vm1, %v22_v2  ;;  %v123_v6 = vld [vmem:[%s344_s3] sm:$0xff]  ;;  %v124_v18 = vld [vmem:[%s344_s3 + $0x8] sm:$0x3] }
   0x5   :  { %253 = vmatprep.mubr.msk.f32.mxu1 %vm137_vm2, %v123_v6  ;;  %v125_v7 = vld [vmem:[%s345_s4] sm:$0xff] }
   0x6   :  { %129 = vperm.xlu1 %265, %v125_v7  }
   0x8   :  { %32 = vperm.xlu0 %264, %v24_v5  }
   0xa   :  { %134 = vperm.xlu1 %265, %v126_v8  }
  0x83   :  { %v28_v9 = vpop.permute.xlu0 %27 }
  0x85   :  { %v130_v19 = vpop.permute.xlu1 %129 }
  0x87   :  { %v33_v10 = vpop.permute.xlu0 %32 }
  0x89   :  { %v135_v20 = vpop.permute.xlu1 %134 }
  0xd7   :  { %v248_v11 = vpop.f32.mrb[0].mxu0 }
  0xd8   :  { %v118_v12 = vadd.f32 %v248_v11, %v33_v10  ;;  %v112_v13 = vpop.f32.mrb[1].mxu0 }
  0xd9   :  { %v113_v14 = vadd.f32 %v112_v13, %v28_v9 }
  0xda   :  { %266 = vtanh.f32 %v118_v12 }
  0xdb   :  { %268 = vtanh.f32 %v113_v14 }
  0xe4   :  { %v267_v15 = vpop.eup %266 }
  0xe5   :  { %v269_v16 = vpop.eup %268 }
  0xe6   :  { %v256_v17 = vpack.c.bf16 %v267_v15, %v269_v16 }
  0xe8   :  { %258 = vmatprep.subr.msk.bf16.mxu1 %vm257_vm5, %v256_v17 }
  0xe9   :  { %261 = vmatpush3.bf16.msk.msra.mxu1 %vm257_vm5, %v256_v17 }
  0xec   :  { %254 = vmatmul.mubr.msk.f32.vlgmr.msra.gmra.mrb[0].mxu1 %vm137_vm2, %v124_v18 }
 0x1bf   :  { %v255_v21 = vpop.f32.mrb[0].mxu1 }
 0x1c0   :  { %v220_v22 = vadd.f32 %v255_v21, %v135_v20  ;;  %v214_v23 = vpop.f32.mrb[1].mxu1 }
 0x1c1   :  { %v215_v24 = vadd.f32 %v214_v23, %v130_v19 }
 0x1c2   :  { %270 = vtanh.f32 %v220_v22 }
 0x1c3   :  { %272 = vtanh.f32 %v215_v24 }
 0x1cc   :  { %v271_v25 = vpop.eup %270 }
 0x1cd   :  { %v273_v26 = vpop.eup %272  ;;  %226 = vst [vmem:[%s346_s5 + $0x8] sm:$0x3] %v271_v25 }
 0x1ce   :  { %225 = vst [vmem:[%s346_s5] sm:$0xff] %v273_v26 }

</bundles_post_ra>
